<compile_context>
chip_gen: v5e
topology: v5e:2x2
jax: 0.10.0
libtpu: 0.0.40
codegen_flags: <defaults>
</compile_context>

<pallas_src>
import functools

import jax
import jax.numpy as jnp
from jax.experimental import pallas as pl
from jax.experimental.pallas import tpu as pltpu


def _round_up(x, m):
    return ((x + m - 1) // m) * m


def _embedding_gather_kernel(ids_sm, ids_vmem, w_hbm, out_ref, sem,
                             *, tok_tile, total_vocab, nsem):
    """One token-tile grid step.

    ids_sm   : SMEM (T_chunk,) int32   token ids (scalar prefetch, DMA addressing)
    ids_vmem : VMEM (tok_tile, 1) int32 same ids for this tile (vector mask)
    w_hbm    : HBM  (total_vocab, D)    full (concatenated) embedding table
    out_ref  : VMEM (tok_tile, D)       output tile (DMA gather destination)
    sem      : DMA semaphores, ring of `nsem`
    """
    tile = pl.program_id(0)
    base = tile * tok_tile

    # ---- issue loop: keep up to `nsem` row DMAs in flight -----------------
    @pl.loop(0, tok_tile)
    def _(j):
        slot = j % nsem

        @pl.when(j >= nsem)
        def _():
            # Wait for the DMA that used this semaphore slot `nsem` iters ago
            # (same transfer size, so any row works as the wait descriptor).
            pltpu.make_async_copy(w_hbm.at[0], out_ref.at[j - nsem],
                                  sem.at[slot]).wait()

        vid = ids_sm[base + j]
        # Clamp so the DMA always stays inside the table (no HW bounds check);
        # out-of-range ids are zeroed below.
        row = jnp.clip(vid, 0, total_vocab - 1)
        pltpu.make_async_copy(w_hbm.at[row], out_ref.at[j], sem.at[slot]).start()

    # ---- drain the tail ----------------------------------------------------
    @pl.loop(max(tok_tile - nsem, 0), tok_tile)
    def _(j):
        pltpu.make_async_copy(w_hbm.at[0], out_ref.at[j], sem.at[j % nsem]).wait()

    # ---- zero rows whose id is outside [0, total_vocab) --------------------
    # Matches the PyTorch module: such ids are masked on every rank, so the
    # all-reduced output row is all zeros.  (Valid ids are untouched.)
    vid_vec = ids_vmem[...]                                   # (tok_tile, 1)
    valid = jnp.logical_and(vid_vec >= 0, vid_vec < total_vocab)
    out_ref[...] = jnp.where(valid, out_ref[...], 0).astype(out_ref.dtype)


def _gather_call(ids_chunk, w_full, *, tok_tile, total_vocab, nsem):
    """Gather embedding rows for one chunk of tokens (len multiple of tok_tile)."""
    t_chunk = ids_chunk.shape[0]
    _, d = w_full.shape
    itemsize = jnp.dtype(w_full.dtype).itemsize

    kernel = functools.partial(_embedding_gather_kernel,
                               tok_tile=tok_tile,
                               total_vocab=total_vocab,
                               nsem=nsem)

    return pl.pallas_call(
        kernel,
        out_shape=jax.ShapeDtypeStruct((t_chunk, d), w_full.dtype),
        grid_spec=pltpu.PrefetchScalarGridSpec(
            num_scalar_prefetch=1,                     # ids -> SMEM
            grid=(t_chunk // tok_tile,),
            in_specs=[
                # Same ids as a small VMEM block for the vectorized mask.
                pl.BlockSpec((tok_tile, 1), lambda i, ids_sm: (i, 0)),
                # Full weight table stays in HBM; rows are DMA-gathered.
                pl.BlockSpec(memory_space=pl.ANY),
            ],
            out_specs=pl.BlockSpec((tok_tile, d), lambda i, ids_sm: (i, 0)),
            scratch_shapes=[pltpu.SemaphoreType.DMA((nsem,))],
        ),
        compiler_params=pltpu.CompilerParams(
            dimension_semantics=("parallel",),         # v7x: 2 TCs share tiles
        ),
        cost_estimate=pl.CostEstimate(
            flops=0,
            transcendentals=0,
            bytes_accessed=2 * t_chunk * d * itemsize + 4 * t_chunk,
        ),
    )(ids_chunk, ids_chunk.reshape(t_chunk, 1), w_full)


def vocab_parallel_embedding_forward(ids, weight_partitions, vocab_starts,
                                     *, tok_tile=128, nsem=8,
                                     max_tokens_per_call=32768):
    """Full VocabParallelEmbedding.forward (all TP ranks fused, all-reduce included).

    ids               : (B, S) int32 global token ids
    weight_partitions : list of (V_part, D) arrays, one per TP rank (uniform split)
    vocab_starts      : list of ints, vocab_start_index per TP rank
    returns           : (B, S, D)
    """
    b, s = ids.shape
    num_ranks = len(weight_partitions)
    v_part, d = weight_partitions[0].shape
    total_vocab = num_ranks * v_part

    # Uniform Megatron split assumed (vocab_starts[r] == r * v_part).
    # TODO(synk): ragged vocab partitions would need a starts-based row lookup.
    for r, start in enumerate(vocab_starts):
        if int(start) != r * v_part:
            raise ValueError("vocab partitions must be the uniform Megatron split")

    # Concatenating the partitions along dim 0 rebuilds the master weight;
    # the masked per-rank lookups + all-reduce(sum) == one gather on this table.
    w_full = jnp.concatenate([jnp.asarray(w) for w in weight_partitions], axis=0)

    t = b * s
    ids_flat = ids.reshape(t).astype(jnp.int32)

    # Sublane-dense tile: multiple of 8 rows (f32); shrink for tiny inputs.
    tok_tile = max(8, min(tok_tile, _round_up(t, 8)))
    tok_tile = _round_up(tok_tile, 8)
    nsem = max(1, min(nsem, tok_tile))

    t_pad = _round_up(t, tok_tile)
    if t_pad != t:
        ids_flat = jnp.pad(ids_flat, (0, t_pad - t))           # pad with id 0

    # Chunk the token axis so the scalar-prefetched id array fits SMEM.
    chunk = _round_up(min(max_tokens_per_call, t_pad), tok_tile)
    outs = []
    for off in range(0, t_pad, chunk):
        ids_c = ids_flat[off:off + chunk]
        outs.append(_gather_call(ids_c, w_full,
                                 tok_tile=tok_tile,
                                 total_vocab=total_vocab,
                                 nsem=nsem))
    out = outs[0] if len(outs) == 1 else jnp.concatenate(outs, axis=0)
    return out[:t].reshape(b, s, d)


if __name__ == "__main__":
    # Module config (small, consistent with the PyTorch __init__).
    num_embeddings = 64       # vocabulary size
    embedding_dim = 32        # hidden size
    tp_size = 2               # tensor model parallel world size
    batch, seq = 2, 8

    key = jax.random.PRNGKey(0)
    k_w, k_ids = jax.random.split(key)

    # Deterministic "xavier_normal_"-style init of the master weight
    # (num_embeddings, embedding_dim), split along the vocab dim (dim 0) as
    # _initialize_affine_weight_cpu does for stride=1.
    std = (2.0 / (num_embeddings + embedding_dim)) ** 0.5
    master_weight = std * jax.random.normal(
        k_w, (num_embeddings, embedding_dim), dtype=jnp.float32
    )
    per_partition = num_embeddings // tp_size
    weight_partitions = [
        master_weight[r * per_partition:(r + 1) * per_partition]
        for r in range(tp_size)
    ]
    vocab_starts = [r * per_partition for r in range(tp_size)]

    # Input token ids (B, S); force a few partition-boundary cases.
    ids = jax.random.randint(
        k_ids, (batch, seq), minval=0, maxval=num_embeddings, dtype=jnp.int32
    )
    ids = ids.at[0, 0].set(0)
    ids = ids.at[0, 1].set(num_embeddings - 1)
    ids = ids.at[0, 2].set(per_partition - 1)
    ids = ids.at[0, 3].set(per_partition)

    out = vocab_parallel_embedding_forward(ids, weight_partitions, vocab_starts)
    out = jax.block_until_ready(out)

    # Reference: plain embedding lookup on the full (unsharded) weight
    # (== sum over ranks of the masked per-rank lookups, i.e. the all-reduce).
    ref = jnp.take(master_weight, ids.reshape(-1), axis=0).reshape(
        batch, seq, embedding_dim
    )
    assert out.shape == (batch, seq, embedding_dim)
    assert jnp.allclose(out, ref, atol=1e-6, rtol=1e-6)

    print("KERNEL_OK")
</pallas_src>

<mosaic_0001>
module attributes {stable_mosaic.version = 11 : i64} {
  func.func @_embedding_gather_kernel(%arg0: i32, %arg1: memref<16xi32, #tpu.memory_space<smem>>, %arg2: memref<16x1xi32, #tpu.memory_space<vmem>>, %arg3: memref<64x32xf32, #tpu.memory_space<any>>, %arg4: memref<16x32xf32, #tpu.memory_space<vmem>>, %arg5: memref<8x!tpu.dma_semaphore, #tpu.memory_space<semaphore_mem>>) attributes {dimension_semantics = [#tpu.dimension_semantics<parallel>], iteration_bounds = array<i64: 1>, scalar_prefetch = 1 : i64, scratch_operands = 1 : i64, tpu.core_type = #tpu.core_type<tc>, window_params = [{transform_indices = @transform_0, window_bounds = array<i64: 16, 1>}, {}, {transform_indices = @transform_2, window_bounds = array<i64: 16, 32>}]} {
    %c16_i32 = arith.constant 16 : i32
    %0 = arith.muli %arg0, %c16_i32 : i32
    %c0_i32 = arith.constant 0 : i32
    %c16_i32_0 = arith.constant 16 : i32
    %1 = arith.addi %c0_i32, %c16_i32_0 : i32
    %c1_i32 = arith.constant 1 : i32
    scf.for %arg6 = %c0_i32 to %1 step %c1_i32  : i32 {
      %c1_i32_12 = arith.constant 1 : i32
      %16 = arith.muli %arg6, %c1_i32_12 : i32
      %c0_i32_13 = arith.constant 0 : i32
      %17 = arith.addi %c0_i32_13, %16 : i32
      %c8_i32_14 = arith.constant 8 : i32
      %c0_i32_15 = arith.constant 0 : i32
      %18 = arith.cmpi eq, %c8_i32_14, %c0_i32_15 : i32
      %c1_i32_16 = arith.constant 1 : i32
      %19 = arith.select %18, %c1_i32_16, %c8_i32_14 : i32
      %20 = arith.remsi %17, %19 : i32
      %c0_i32_17 = arith.constant 0 : i32
      %21 = arith.cmpi ne, %20, %c0_i32_17 : i32
      %c0_i32_18 = arith.constant 0 : i32
      %22 = arith.cmpi slt, %20, %c0_i32_18 : i32
      %c0_i32_19 = arith.constant 0 : i32
      %23 = arith.cmpi slt, %19, %c0_i32_19 : i32
      %24 = arith.xori %22, %23 : i1
      %25 = arith.andi %24, %21 : i1
      %26 = arith.addi %20, %19 : i32
      %27 = arith.select %25, %26, %20 : i32
      %c8_i32_20 = arith.constant 8 : i32
      %28 = arith.cmpi sge, %17, %c8_i32_20 : i32
      %29 = arith.extui %28 : i1 to i32
      %c0_i32_21 = arith.constant 0 : i32
      %30 = arith.cmpi ne, %29, %c0_i32_21 : i32
      scf.if %30 {
        %c8_i32_25 = arith.constant 8 : i32
        %42 = arith.subi %17, %c8_i32_25 : i32
        %c0_i32_26 = arith.constant 0 : i32
        %c0_i32_27 = arith.constant 0 : i32
        %43 = tpu.memref_slice %arg3[%c0_i32_26, %c0_i32_27] : memref<64x32xf32, #tpu.memory_space<any>> -> memref<1x32xf32, #tpu.memory_space<any>>
        %44 = tpu.memref_squeeze %43 : memref<1x32xf32, #tpu.memory_space<any>> -> memref<32xf32, #tpu.memory_space<any>>
        %c0_i32_28 = arith.constant 0 : i32
        %45 = tpu.memref_slice %arg4[%42, %c0_i32_28] : memref<16x32xf32, #tpu.memory_space<vmem>> -> memref<1x32xf32, #tpu.memory_space<vmem>>
        %46 = tpu.memref_squeeze %45 : memref<1x32xf32, #tpu.memory_space<vmem>> -> memref<32xf32, #tpu.memory_space<vmem>>
        %47 = tpu.memref_slice %arg5[%27] : memref<8x!tpu.dma_semaphore, #tpu.memory_space<semaphore_mem>> -> memref<1x!tpu.dma_semaphore, #tpu.memory_space<semaphore_mem>>
        %48 = tpu.memref_squeeze %47 : memref<1x!tpu.dma_semaphore, #tpu.memory_space<semaphore_mem>> -> memref<!tpu.dma_semaphore, #tpu.memory_space<semaphore_mem>>
        tpu.wait_dma2 semaphore(%48 : memref<!tpu.dma_semaphore, #tpu.memory_space<semaphore_mem>>) src(%44 : memref<32xf32, #tpu.memory_space<any>>) dst(%46 : memref<32xf32, #tpu.memory_space<vmem>>)
      } else {
      }
      %31 = arith.addi %0, %17 : i32
      %32 = arith.index_cast %31 : i32 to index
      %33 = memref.load %arg1[%32] : memref<16xi32, #tpu.memory_space<smem>>
      %c0_i32_22 = arith.constant 0 : i32
      %c63_i32 = arith.constant 63 : i32
      %34 = arith.maxsi %c0_i32_22, %33 : i32
      %35 = arith.minsi %c63_i32, %34 : i32
      %c0_i32_23 = arith.constant 0 : i32
      %36 = tpu.memref_slice %arg3[%35, %c0_i32_23] : memref<64x32xf32, #tpu.memory_space<any>> -> memref<1x32xf32, #tpu.memory_space<any>>
      %37 = tpu.memref_squeeze %36 : memref<1x32xf32, #tpu.memory_space<any>> -> memref<32xf32, #tpu.memory_space<any>>
      %c0_i32_24 = arith.constant 0 : i32
      %38 = tpu.memref_slice %arg4[%17, %c0_i32_24] : memref<16x32xf32, #tpu.memory_space<vmem>> -> memref<1x32xf32, #tpu.memory_space<vmem>>
      %39 = tpu.memref_squeeze %38 : memref<1x32xf32, #tpu.memory_space<vmem>> -> memref<32xf32, #tpu.memory_space<vmem>>
      %40 = tpu.memref_slice %arg5[%27] : memref<8x!tpu.dma_semaphore, #tpu.memory_space<semaphore_mem>> -> memref<1x!tpu.dma_semaphore, #tpu.memory_space<semaphore_mem>>
      %41 = tpu.memref_squeeze %40 : memref<1x!tpu.dma_semaphore, #tpu.memory_space<semaphore_mem>> -> memref<!tpu.dma_semaphore, #tpu.memory_space<semaphore_mem>>
      tpu.enqueue_dma source(%37 : memref<32xf32, #tpu.memory_space<any>>) target(%39 : memref<32xf32, #tpu.memory_space<vmem>>) target_semaphore(%41 : memref<!tpu.dma_semaphore, #tpu.memory_space<semaphore_mem>>)
    }
    %c16_i32_1 = arith.constant 16 : i32
    %c0_i32_2 = arith.constant 0 : i32
    %c8_i32 = arith.constant 8 : i32
    %2 = arith.addi %c0_i32_2, %c8_i32 : i32
    %c1_i32_3 = arith.constant 1 : i32
    scf.for %arg6 = %c0_i32_2 to %2 step %c1_i32_3  : i32 {
      %c1_i32_12 = arith.constant 1 : i32
      %16 = arith.muli %arg6, %c1_i32_12 : i32
      %c8_i32_13 = arith.constant 8 : i32
      %17 = arith.addi %c8_i32_13, %16 : i32
      %c8_i32_14 = arith.constant 8 : i32
      %c0_i32_15 = arith.constant 0 : i32
      %18 = arith.cmpi eq, %c8_i32_14, %c0_i32_15 : i32
      %c1_i32_16 = arith.constant 1 : i32
      %19 = arith.select %18, %c1_i32_16, %c8_i32_14 : i32
      %20 = arith.remsi %17, %19 : i32
      %c0_i32_17 = arith.constant 0 : i32
      %21 = arith.cmpi ne, %20, %c0_i32_17 : i32
      %c0_i32_18 = arith.constant 0 : i32
      %22 = arith.cmpi slt, %20, %c0_i32_18 : i32
      %c0_i32_19 = arith.constant 0 : i32
      %23 = arith.cmpi slt, %19, %c0_i32_19 : i32
      %24 = arith.xori %22, %23 : i1
      %25 = arith.andi %24, %21 : i1
      %26 = arith.addi %20, %19 : i32
      %27 = arith.select %25, %26, %20 : i32
      %c0_i32_20 = arith.constant 0 : i32
      %c0_i32_21 = arith.constant 0 : i32
      %28 = tpu.memref_slice %arg3[%c0_i32_20, %c0_i32_21] : memref<64x32xf32, #tpu.memory_space<any>> -> memref<1x32xf32, #tpu.memory_space<any>>
      %29 = tpu.memref_squeeze %28 : memref<1x32xf32, #tpu.memory_space<any>> -> memref<32xf32, #tpu.memory_space<any>>
      %c0_i32_22 = arith.constant 0 : i32
      %30 = tpu.memref_slice %arg4[%17, %c0_i32_22] : memref<16x32xf32, #tpu.memory_space<vmem>> -> memref<1x32xf32, #tpu.memory_space<vmem>>
      %31 = tpu.memref_squeeze %30 : memref<1x32xf32, #tpu.memory_space<vmem>> -> memref<32xf32, #tpu.memory_space<vmem>>
      %32 = tpu.memref_slice %arg5[%27] : memref<8x!tpu.dma_semaphore, #tpu.memory_space<semaphore_mem>> -> memref<1x!tpu.dma_semaphore, #tpu.memory_space<semaphore_mem>>
      %33 = tpu.memref_squeeze %32 : memref<1x!tpu.dma_semaphore, #tpu.memory_space<semaphore_mem>> -> memref<!tpu.dma_semaphore, #tpu.memory_space<semaphore_mem>>
      tpu.wait_dma2 semaphore(%33 : memref<!tpu.dma_semaphore, #tpu.memory_space<semaphore_mem>>) src(%29 : memref<32xf32, #tpu.memory_space<any>>) dst(%31 : memref<32xf32, #tpu.memory_space<vmem>>)
    }
    %c8_i32_4 = arith.constant 8 : i32
    %c0 = arith.constant 0 : index
    %c0_5 = arith.constant 0 : index
    %3 = vector.load %arg2[%c0, %c0_5] : memref<16x1xi32, #tpu.memory_space<vmem>>, vector<16x1xi32>
    %c0_i32_6 = arith.constant 0 : i32
    %4 = vector.broadcast %c0_i32_6 : i32 to vector<16x1xi32>
    %5 = arith.cmpi sge, %3, %4 : vector<16x1xi32>
    %c64_i32 = arith.constant 64 : i32
    %6 = vector.broadcast %c64_i32 : i32 to vector<16x1xi32>
    %7 = arith.cmpi slt, %3, %6 : vector<16x1xi32>
    %8 = arith.andi %5, %7 : vector<16x1xi1>
    %c0_7 = arith.constant 0 : index
    %c0_8 = arith.constant 0 : index
    %9 = vector.load %arg4[%c0_7, %c0_8] : memref<16x32xf32, #tpu.memory_space<vmem>>, vector<16x32xf32>
    %c0_i32_9 = arith.constant 0 : i32
    %10 = arith.sitofp %c0_i32_9 : i32 to f32
    %11 = vector.shape_cast %8 : vector<16x1xi1> to vector<16x1xi1>
    %12 = vector.broadcast %11 : vector<16x1xi1> to vector<16x32xi1>
    %13 = vector.broadcast %10 : f32 to vector<16x32xf32>
    %14 = arith.select %12, %9, %13 : vector<16x32xi1>, vector<16x32xf32>
    %c0_10 = arith.constant 0 : index
    %c0_11 = arith.constant 0 : index
    %15 = vector.load %arg4[%c0_10, %c0_11] : memref<16x32xf32, #tpu.memory_space<vmem>>, vector<16x32xf32>
    tpu.vector_store %arg4[%c0_10, %c0_11], %14 {strides = array<i32>} : memref<16x32xf32, #tpu.memory_space<vmem>>, vector<16x32xf32>,
    return
  }
  func.func @transform_0(%arg0: i32, %arg1: memref<16xi32, #tpu.memory_space<smem>>) -> (i32, i32) {
    %c0_i32 = arith.constant 0 : i32
    %c0_i32_0 = arith.constant 0 : i32
    return %arg0, %c0_i32 : i32, i32
  }
  func.func @transform_2(%arg0: i32, %arg1: memref<16xi32, #tpu.memory_space<smem>>) -> (i32, i32) {
    %c0_i32 = arith.constant 0 : i32
    %c0_i32_0 = arith.constant 0 : i32
    return %arg0, %c0_i32 : i32, i32
  }
}

</mosaic_0001>

<bundles_post_ra>
// kernel: tpu_custom_call.1
= control target key start
LH: loop header
LB: loop body
LE: loop exit
PB: predicated region body
PF: predicated region fallthrough
CT: control target
= control target key end

     0   :  { %s336_s15 = smov [#allocation4]   ;;  %s381_s0 = inlined_call_operand.vmem [shape: s32[16], index: 0, kind: input, shape index: {}]   ;;  %s382_s1 = inlined_call_operand.vmem [shape: s32[16,1], index: 1, kind: input, shape index: {}]   ;;  %s383_s2 = inlined_call_operand.vmem [shape: f32[64,32], index: 2, kind: input, shape index: {}]   ;;  %s384_s3 = inlined_call_operand.hbm [shape: f32[16,32], index: 3, kind: output, shape index: {}]  }
   0x1   :  { %s9_s14 = sshll.u32 %s381_s0, 4  ;;  %s10_s14 = int_to_ptr.vmem [resolvable:$true] %s9_s14 }
   0x2   :  { %12 = dma.vmem_to_smem %s10_s14, 16, %s336_s15, [#allocation3] }
   0x3   :  { %318 = dma.done.wait [#allocation3], 16 }
   0x4   :  { %319 = vsyncadd [#allocation3], 4294967280 }
   0x5   :  { %15 = sfence }
   0x6   :  { %16 = vsyncpa [#allocation6], 0  ;;  %s364_s16 = smov 0  }
   0x7 LB: > { %p26_p0 = scmp.lt.s32.totalorder %s330_s16, 0  ;;  %s27_s17 = ssub.s32 0, %s330_s16  ;;  %s330_s16 = sphi %s364_s16, %s25_s16  }
   0x8   : > { %s227_s18 = smin.u32 %s330_s16, %s27_s17  ;;  %p251_p1 = scmp.ge.s32.totalorder %s330_s16, 8 }
   0x9   : > { %s29_s19 = sand.u32 7, %s227_s18  }
   0xa   : > { %s30_s20 = ssub.s32 0, %s29_s19 }
   0xb   : > { %s386_s20 = smov (!%p26_p0, %s30_s20), %s29_s19 }
   0xc   : > { %p229_p2 = scmp.lt.s32.totalorder %s386_s20, 0  ;;  %s36_s0 = sadd.s32 8, %s386_s20 }
   0xe   : > { %s388_s0 = smov (!%p229_p2, %s36_s0), %s386_s20 }
   0xf   : > { %s42_s21 = scalar_lea.sflag [#allocation2], %s388_s0 }
  0x10   : > { %321 = dma.done.wait (%p251_p1), %s42_s21, 16 }
  0x11   : > { %323 = vsyncadd (%p251_p1), %s42_s21, 4294967280  ;;  %s46_s22 = sld [smem:[#allocation4 + %s330_s16]]  ;;  %s52_s26 = scalar_lea.vmem [#allocation5], %s330_s16 }
  0x17   : > { %p47_p3 = scmp.gt.s32.totalorder %s46_s22, 0  ;;  %p231_p4 = scmp.lt.s32.totalorder %s46_s22, 63 }
  0x19   : > { %s390_s22 = smov (!%p47_p3, %s46_s22), 0 }
  0x1a   : > { %s392_s22 = smov (!%p231_p4, %s390_s22), 63 }
  0x1b   : > { %s51_s25 = scalar_lea.vmem %s383_s2, %s392_s22 }
  0x1c   : > { %v68_v0 = vld [vmem:[%s51_s25] sm:$0x1] }
  0x1d   : > { %69 = vst [vmem:[%s52_s26] sm:$0x1] %v68_v0 }
  0x1e   : > { %87 = vsyncadd %s42_s21, 16  ;;  %s25_s16 = sadd.s32 1, %s330_s16  }
  0x1f   : > { %p22_p5 = scmp.ge.s32.totalorder %s25_s16, 16  }
  0x20   :  { %s332_s27 = smov (%p22_p5), 0  }
  0x21   :  { %24 = sbr.rel (!%p22_p5) target bundleno = 7 (0x7), region = 88 }
  0x26 LB: > { %s94_s28 = sadd.s32 8, %s334_s27  ;;  %s334_s27 = sphi %s332_s27, %s93_s27  }
  0x27   : > { %p95_p6 = scmp.lt.s32.totalorder %s94_s28, 0  ;;  %s96_s29 = ssub.s32 0, %s94_s28 }
  0x28   : > { %s236_s30 = smin.u32 %s96_s29, %s94_s28 }
  0x29   : > { %s98_s4 = sand.u32 7, %s236_s30  }
  0x2a   : > { %s99_s5 = ssub.s32 0, %s98_s4 }
  0x2b   : > { %s394_s5 = smov (!%p95_p6, %s99_s5), %s98_s4 }
  0x2c   : > { %p238_p7 = scmp.lt.s32.totalorder %s394_s5, 0  ;;  %s105_s6 = sadd.s32 8, %s394_s5 }
  0x2e   : > { %s396_s6 = smov (!%p238_p7, %s105_s6), %s394_s5 }
  0x2f   : > { %s107_s7 = scalar_lea.sflag [#allocation2], %s396_s6 }
  0x30   : > { %324 = dma.done.wait %s107_s7, 16 }
  0x31   : > { %325 = vsyncadd %s107_s7, 4294967280  ;;  %s93_s27 = sadd.s32 1, %s334_s27  }
  0x32   : > { %p90_p8 = scmp.ge.s32.totalorder %s93_s27, 8  }
  0x33   :  { %v110_v1 = vld [vmem:[%s382_s1] sm:$0xff] (%p90_p8)  ;;  %v111_v2 = vld [vmem:[%s382_s1 + $0x8] sm:$0xff] (%p90_p8)  ;;  %v337_v3 = vmov (%p90_p8), 0   ;;  %vm132_vm6 = vcmask (%p90_p8), 261120   ;;  %s338_s11 = smov (%p90_p8), [#allocation5]   ;;  %s141_s14 = sshll.u32 (%p90_p8), %s384_s3, 4  ;;  %s142_s14 = int_to_ptr.hbm [resolvable:$true] %s141_s14 }
  0x34   :  { %92 = sbr.rel (!%p90_p8) target bundleno = 38 (0x26), region = 99  ;;  %273 = vset.pattern.permute.xlu0 (%p90_p8), %v337_v3  ;;  %vm112_vm0 = vcmp.ge.s32.totalorder (%p90_p8), %v110_v1, 0  ;;  %vm114_vm1 = vcmp.lt.s32.totalorder (%p90_p8), %v110_v1, 64  ;;  %vm113_vm3 = vcmp.ge.s32.totalorder (%p90_p8), %v111_v2, 0  ;;  %vm115_vm4 = vcmp.lt.s32.totalorder (%p90_p8), %v111_v2, 64  ;;  %v118_v6 = vld [vmem:[#allocation5] sm:$0xff] (%p90_p8) }
  0x35   :  { %vm116_vm2 = vmand (%p90_p8), %vm112_vm0, %vm114_vm1  ;;  %s139_s1 = sshll.u32 (%p90_p8), %s338_s11, 4  ;;  %v119_v9 = vld [vmem:[#allocation5 + $0x8] sm:$0xff] (%p90_p8)  ;;  %s339_s15 = smov (%p90_p8), 128   ;;  %s140_s1 = int_to_ptr.vmem [resolvable:$true] %s139_s1 }
  0x36   :  { %v120_v4 = vsel (%p90_p8), %vm116_vm2, 1, %v337_v3  ;;  %vm117_vm5 = vmand (%p90_p8), %vm113_vm3, %vm115_vm4  ;;  %s340_s16 = smov (%p90_p8), 8  }
  0x37   :  { %123 = vperm.xlu0 (%p90_p8), %273, %v120_v4   ;;  %v121_v5 = vsel (%p90_p8), %vm117_vm5, 1, %v337_v3 }
  0x3f   :  { %126 = vperm.xlu0 %273, %v121_v5  }
  0xa9   :  { %v124_v7 = vpop.permute.xlu0 %123 }
  0xaa   :  { %vm128_vm7 = vcmp.eq.s32.totalorder %v124_v7, 1 }
  0xab   :  { %v130_v8 = vsel %vm128_vm7, %v118_v6, 0.0 }
  0xac   :  { %133 = vst.msk [vmem:[#allocation5] sm:$0xff] %vm132_vm6, %v130_v8 }
  0xb1   :  { %v127_v10 = vpop.permute.xlu0 %126 }
  0xb2   :  { %vm129_vm8 = vcmp.eq.s32.totalorder %v127_v10, 1 }
  0xb3   :  { %v131_v11 = vsel %vm129_vm8, %v119_v9, 0.0 }
  0xb4   :  { %134 = vst.msk [vmem:[#allocation5 + $0x8] sm:$0xff] %vm132_vm6, %v131_v11 }
  0xb5   :  { %147 = dma.vmem_to_hbm [thread:$0]  %s140_s1, 256, %s142_s14, [#allocation6], %s339_s15, %s339_s15, %s340_s16  }
  0xb6   :  { %326 = dma.done.wait [#allocation6], 256  }
  0xb7   :  { %327 = vsyncadd [#allocation6], 4294967040 }
  0xb8   :  { %152 = vsyncpa [#allocation6], 1 }
  0xb9   :  { %153 = vsyncmov [#allocation2] }
  0xbc   :  { %s154_s17 = vpop.sfrf %153 }
  0xbd   :  { %p239_p9 = scmp.ne.s32.totalorder %s154_s17, 0 }
  0xbf   :  { %158 = shalt.err (%p239_p9)  }
  0xc0   :  { %160 = vsyncmov [#allocation2 + $0x1] }
  0xc3   :  { %s161_s18 = vpop.sfrf %160 }
  0xc4   :  { %p240_p10 = scmp.ne.s32.totalorder %s161_s18, 0 }
  0xc6   :  { %165 = shalt.err (%p240_p10)  }
  0xc7   :  { %167 = vsyncmov [#allocation2 + $0x2] }
  0xca   :  { %s168_s3 = vpop.sfrf %167 }
  0xcb   :  { %p241_p11 = scmp.ne.s32.totalorder %s168_s3, 0 }
  0xcd   :  { %172 = shalt.err (%p241_p11)  }
  0xce   :  { %174 = vsyncmov [#allocation2 + $0x3] }
  0xd1   :  { %s175_s19 = vpop.sfrf %174 }
  0xd2   :  { %p242_p12 = scmp.ne.s32.totalorder %s175_s19, 0 }
  0xd4   :  { %179 = shalt.err (%p242_p12)  }
  0xd5   :  { %181 = vsyncmov [#allocation2 + $0x4] }
  0xd8   :  { %s182_s20 = vpop.sfrf %181 }
  0xd9   :  { %p243_p13 = scmp.ne.s32.totalorder %s182_s20, 0 }
  0xdb   :  { %186 = shalt.err (%p243_p13)  }
  0xdc   :  { %188 = vsyncmov [#allocation2 + $0x5] }
  0xdf   :  { %s189_s0 = vpop.sfrf %188 }
  0xe0   :  { %p244_p0 = scmp.ne.s32.totalorder %s189_s0, 0 }
  0xe2   :  { %193 = shalt.err (%p244_p0)  }
  0xe3   :  { %195 = vsyncmov [#allocation2 + $0x6] }
  0xe6   :  { %s196_s21 = vpop.sfrf %195 }
  0xe7   :  { %p245_p1 = scmp.ne.s32.totalorder %s196_s21, 0 }
  0xe9   :  { %200 = shalt.err (%p245_p1)  }
  0xea   :  { %202 = vsyncmov [#allocation2 + $0x7] }
  0xed   :  { %s203_s22 = vpop.sfrf %202 }
  0xee   :  { %p246_p2 = scmp.ne.s32.totalorder %s203_s22, 0 }
  0xf0   :  { %207 = shalt.err (%p246_p2)  }

</bundles_post_ra>
